<compile_context>
chip_gen: v7x
topology: tpu7x:2x2x1
jax: 0.10.0
libtpu: 0.0.40
codegen_flags: <defaults>
</compile_context>

<pallas_src>
import math

import jax
import jax.numpy as jnp
from jax.experimental import pallas as pl
from jax.experimental.pallas import tpu as pltpu


_SQRT1_2 = 0.7071067811865476


def _erf_approx(x):
    # Abramowitz & Stegun 7.1.26 rational approximation, |error| <= 1.5e-7.
    a1, a2, a3, a4, a5 = (0.254829592, -0.284496736, 1.421413741,
                          -1.453152027, 1.061405429)
    p = 0.3275911
    ax = jnp.abs(x)
    t = 1.0 / (1.0 + p * ax)
    poly = ((((a5 * t + a4) * t + a3) * t + a2) * t + a1) * t
    y = 1.0 - poly * jnp.exp(-ax * ax)
    return jnp.where(x < 0, -y, y)


def _gelu_exact(x):
    # Matches torch nn.GELU() (erf formulation) to ~1e-7.
    return 0.5 * x * (1.0 + _erf_approx(x * _SQRT1_2))


def _trend_block_kernel(x_ref, a1_ref, b1_ref, c2_ref, bo_ref, o_ref):
    # x_ref : (BT, in_dim*L)         streamed per grid step
    # a1_ref: (in_dim*L, 3*L)        folded conv1 (taps + zero-pad shifts)
    # b1_ref: (1, 3*L)               conv1 bias broadcast over length
    # c2_ref: (3*L, out_dim*F)       folded conv2 + poly combine + transpose
    # bo_ref: (1, out_dim*F)         folded conv2 bias * poly column sums
    # o_ref : (BT, out_dim*F)
    x = x_ref[...].astype(jnp.float32)
    y = jnp.dot(x, a1_ref[...], preferred_element_type=jnp.float32)
    h = _gelu_exact(y + b1_ref[...])
    out = jnp.dot(h, c2_ref[...], preferred_element_type=jnp.float32)
    o_ref[...] = (out + bo_ref[...]).astype(o_ref.dtype)


def _pick_batch_tile(B):
    """Batch rows per grid step.

    Multiple of 8 in [8, 32] (fills MXU sublanes, satisfies the (8,128) block
    constraint) or the whole batch when B <= 8.  Keeps >= 2 grid steps when
    possible so the "parallel" axis can shard across both v7x TensorCores."""
    if B <= 8:
        return B
    bt = 32
    while bt > 8 and pl.cdiv(B, bt) < 2:
        bt -= 8
    return bt


def trend_block(x, w1, b1, w2, b2, poly_space):
    """TrendBlock forward.

    x: (B, in_dim, in_feat); w1: (3, in_dim, 3); b1: (3,);
    w2: (out_feat, in_feat, 3); b2: (out_feat,); poly_space: (3, out_dim).
    Returns (B, out_dim, out_feat)."""
    B, in_dim, L = x.shape
    out_feat = w2.shape[0]
    out_dim = poly_space.shape[1]
    trend_poly = poly_space.shape[0]
    assert w2.shape[1] == L, "conv2 in_channels must equal in_feat"
    assert w1.shape == (trend_poly, in_dim, 3) and trend_poly == 3

    f32 = jnp.float32
    w1f, b1f = w1.astype(f32), b1.astype(f32)
    w2f, b2f = w2.astype(f32), b2.astype(f32)
    pf = poly_space.astype(f32)

    # ---- Fold conv1 (3 taps + zero padding) into A1: (in_dim*L, 3*L) -------
    # A1[cin*L + l', s*L + l] = sum_k w1[s, cin, k] * [l' == l + k - 1]
    lidx = jnp.arange(L)
    a1 = jnp.zeros((in_dim, L, 3, L), f32)
    for k in range(3):
        shift = (lidx[:, None] == (lidx[None, :] + k - 1)).astype(f32)  # (l', l)
        a1 = a1 + w1f[:, :, k].T[:, None, :, None] * shift[None, :, None, :]
    a1 = a1.reshape(in_dim * L, 3 * L)
    b1row = jnp.repeat(b1f, L).reshape(1, 3 * L)      # b1row[0, s*L + l] = b1[s]

    # ---- Fold conv2 taps + zero padding + poly combine + final transpose ----
    # out[b, d, f] = b_out[d, f] + sum_{s,g} gelu1[b, s, g] * C2[s*L+g, d*F+f]
    # C2[(s,g),(d,f)] = sum_{k, t=s+1-k in [0,2]} poly[t, d] * w2[f, g, k]
    c2 = jnp.zeros((3, L, out_dim, out_feat), f32)
    for s in range(3):
        for k in range(3):
            t = s + 1 - k
            if 0 <= t <= 2:
                c2 = c2.at[s].add(pf[t][None, :, None] * w2f[:, :, k].T[:, None, :])
    c2 = c2.reshape(3 * L, out_dim * out_feat)
    b_out = (pf.sum(axis=0)[:, None] * b2f[None, :]).reshape(1, out_dim * out_feat)

    # ---- Batch tiling (input/output reshapes are free, no jnp.pad of x) ----
    bt = _pick_batch_tile(B)
    n_steps = pl.cdiv(B, bt)
    Bp = n_steps * bt
    x2d = x.reshape(B, in_dim * L)                    # free row-major collapse
    if Bp != B:
        x2d = jnp.pad(x2d, ((0, Bp - B), (0, 0)))     # only when B % bt != 0

    out2d = pl.pallas_call(
        _trend_block_kernel,
        out_shape=jax.ShapeDtypeStruct((Bp, out_dim * out_feat), x.dtype),
        grid=(n_steps,),
        in_specs=[
            pl.BlockSpec((bt, in_dim * L), lambda b: (b, 0)),
            # Constant index maps: fetched once, VMEM-resident across steps.
            pl.BlockSpec((in_dim * L, 3 * L), lambda b: (0, 0)),
            pl.BlockSpec((1, 3 * L), lambda b: (0, 0)),
            pl.BlockSpec((3 * L, out_dim * out_feat), lambda b: (0, 0)),
            pl.BlockSpec((1, out_dim * out_feat), lambda b: (0, 0)),
        ],
        out_specs=pl.BlockSpec((bt, out_dim * out_feat), lambda b: (b, 0)),
        compiler_params=pltpu.CompilerParams(
            dimension_semantics=("parallel",)),
    )(x2d, a1, b1row, c2, b_out)

    if Bp != B:
        out2d = out2d[:B]
    return out2d.reshape(B, out_dim, out_feat)        # free trailing split


# ---------------------------- pure-JAX reference ----------------------------
def _conv1d(x, w, b):
    # x: (B, C_in, L); w: (C_out, C_in, 3); torch Conv1d(k=3, pad=1) semantics.
    y = jax.lax.conv_general_dilated(
        x, w, window_strides=(1,), padding=((1, 1),),
        dimension_numbers=("NCH", "OIH", "NCH"))
    return y + b[None, :, None]


def _reference(x, w1, b1, w2, b2, poly_space):
    h = jax.nn.gelu(_conv1d(x, w1, b1), approximate=False)   # exact GELU
    h = jnp.transpose(h, (0, 2, 1))
    h = _conv1d(h, w2, b2)                                   # (B, out_feat, 3)
    tv = jnp.einsum("bft,td->bfd", h, poly_space)            # (B, out_feat, out_dim)
    return jnp.transpose(tv, (0, 2, 1))                      # (B, out_dim, out_feat)


if __name__ == "__main__":
    B, in_dim, in_feat = 2, 4, 16
    out_dim, out_feat = 8, 32
    trend_poly = 3

    key = jax.random.PRNGKey(0)
    kx, kw1, kb1, kw2, kb2 = jax.random.split(key, 5)

    x = jax.random.normal(kx, (B, in_dim, in_feat), dtype=jnp.float32)

    # torch Conv1d parameter shapes, uniform(-1/sqrt(fan_in), +) init.
    bound1 = 1.0 / math.sqrt(in_dim * 3)
    w1 = jax.random.uniform(kw1, (trend_poly, in_dim, 3), jnp.float32,
                            -bound1, bound1)
    b1 = jax.random.uniform(kb1, (trend_poly,), jnp.float32, -bound1, bound1)
    bound2 = 1.0 / math.sqrt(in_feat * 3)
    w2 = jax.random.uniform(kw2, (out_feat, in_feat, 3), jnp.float32,
                            -bound2, bound2)
    b2 = jax.random.uniform(kb2, (out_feat,), jnp.float32, -bound2, bound2)

    # poly_space buffer, exactly as in the module's __init__.
    lin = jnp.arange(1, out_dim + 1, dtype=jnp.float32) / (out_dim + 1)
    poly_space = jnp.stack([lin ** float(p + 1) for p in range(trend_poly)],
                           axis=0)                                  # (3, out_dim)

    out = trend_block(x, w1, b1, w2, b2, poly_space)
    out = jax.block_until_ready(out)

    ref = _reference(x, w1, b1, w2, b2, poly_space)
    assert out.shape == (B, out_dim, out_feat)
    err = float(jnp.max(jnp.abs(out - ref)))
    assert jnp.allclose(out, ref, atol=1e-4, rtol=1e-4), err

    print("KERNEL_OK")
</pallas_src>

<mosaic_0001>
module attributes {stable_mosaic.version = 11 : i64} {
  func.func @_trend_block_kernel(%arg0: i32, %arg1: memref<2x64xf32, #tpu.memory_space<vmem>>, %arg2: memref<64x48xf32, #tpu.memory_space<vmem>>, %arg3: memref<1x48xf32, #tpu.memory_space<vmem>>, %arg4: memref<48x256xf32, #tpu.memory_space<vmem>>, %arg5: memref<1x256xf32, #tpu.memory_space<vmem>>, %arg6: memref<2x256xf32, #tpu.memory_space<vmem>>) attributes {dimension_semantics = [#tpu.dimension_semantics<parallel>], iteration_bounds = array<i64: 1>, scalar_prefetch = 0 : i64, scratch_operands = 0 : i64, tpu.core_type = #tpu.core_type<tc>, window_params = [{transform_indices = @transform_0, window_bounds = array<i64: 2, 64>}, {pipeline_mode = #tpu.pipeline_mode<synchronous>, transform_indices = @transform_1, window_bounds = array<i64: 64, 48>}, {pipeline_mode = #tpu.pipeline_mode<synchronous>, transform_indices = @transform_2, window_bounds = array<i64: 1, 48>}, {pipeline_mode = #tpu.pipeline_mode<synchronous>, transform_indices = @transform_3, window_bounds = array<i64: 48, 256>}, {pipeline_mode = #tpu.pipeline_mode<synchronous>, transform_indices = @transform_4, window_bounds = array<i64: 1, 256>}, {transform_indices = @transform_5, window_bounds = array<i64: 2, 256>}]} {
    %c0 = arith.constant 0 : index
    %c0_0 = arith.constant 0 : index
    %0 = vector.load %arg1[%c0, %c0_0] : memref<2x64xf32, #tpu.memory_space<vmem>>, vector<2x64xf32>
    %c0_1 = arith.constant 0 : index
    %c0_2 = arith.constant 0 : index
    %1 = vector.load %arg2[%c0_1, %c0_2] : memref<64x48xf32, #tpu.memory_space<vmem>>, vector<64x48xf32>
    %cst = arith.constant dense<0.000000e+00> : vector<2x48xf32>
    %2 = tpu.matmul %0, %1, %cst {dimension_numbers = #tpu.dot_dimension_numbers<[1], [0], [0], [1], [0, 0, 1, 1], [], []>} : vector<2x64xf32>, vector<64x48xf32>, vector<2x48xf32> -> vector<2x48xf32>
    %c0_3 = arith.constant 0 : index
    %c0_4 = arith.constant 0 : index
    %3 = vector.load %arg3[%c0_3, %c0_4] : memref<1x48xf32, #tpu.memory_space<vmem>>, vector<1x48xf32>
    %4 = vector.broadcast %3 : vector<1x48xf32> to vector<2x48xf32>
    %5 = arith.addf %2, %4 : vector<2x48xf32>
    %cst_5 = arith.constant 5.000000e-01 : f32
    %6 = vector.broadcast %cst_5 : f32 to vector<2x48xf32>
    %7 = arith.mulf %6, %5 : vector<2x48xf32>
    %cst_6 = arith.constant 0.707106769 : f32
    %8 = vector.broadcast %cst_6 : f32 to vector<2x48xf32>
    %9 = arith.mulf %5, %8 : vector<2x48xf32>
    %10 = math.absf %9 : vector<2x48xf32>
    %cst_7 = arith.constant 0.327591091 : f32
    %11 = vector.broadcast %cst_7 : f32 to vector<2x48xf32>
    %12 = arith.mulf %11, %10 : vector<2x48xf32>
    %cst_8 = arith.constant 1.000000e+00 : f32
    %13 = vector.broadcast %cst_8 : f32 to vector<2x48xf32>
    %14 = arith.addf %13, %12 : vector<2x48xf32>
    %cst_9 = arith.constant 1.000000e+00 : f32
    %15 = vector.broadcast %cst_9 : f32 to vector<2x48xf32>
    %16 = arith.divf %15, %14 : vector<2x48xf32>
    %cst_10 = arith.constant 1.06140542 : f32
    %17 = vector.broadcast %cst_10 : f32 to vector<2x48xf32>
    %18 = arith.mulf %17, %16 : vector<2x48xf32>
    %cst_11 = arith.constant -1.45315206 : f32
    %19 = vector.broadcast %cst_11 : f32 to vector<2x48xf32>
    %20 = arith.addf %18, %19 : vector<2x48xf32>
    %21 = arith.mulf %20, %16 : vector<2x48xf32>
    %cst_12 = arith.constant 1.42141378 : f32
    %22 = vector.broadcast %cst_12 : f32 to vector<2x48xf32>
    %23 = arith.addf %21, %22 : vector<2x48xf32>
    %24 = arith.mulf %23, %16 : vector<2x48xf32>
    %cst_13 = arith.constant -0.284496725 : f32
    %25 = vector.broadcast %cst_13 : f32 to vector<2x48xf32>
    %26 = arith.addf %24, %25 : vector<2x48xf32>
    %27 = arith.mulf %26, %16 : vector<2x48xf32>
    %cst_14 = arith.constant 0.254829586 : f32
    %28 = vector.broadcast %cst_14 : f32 to vector<2x48xf32>
    %29 = arith.addf %27, %28 : vector<2x48xf32>
    %30 = arith.mulf %29, %16 : vector<2x48xf32>
    %cst_15 = arith.constant 0.000000e+00 : f32
    %31 = vector.broadcast %cst_15 : f32 to vector<2x48xf32>
    %32 = arith.subf %31, %10 : vector<2x48xf32>
    %33 = arith.mulf %32, %10 : vector<2x48xf32>
    %34 = math.exp %33 : vector<2x48xf32>
    %35 = arith.mulf %30, %34 : vector<2x48xf32>
    %cst_16 = arith.constant 1.000000e+00 : f32
    %36 = vector.broadcast %cst_16 : f32 to vector<2x48xf32>
    %37 = arith.subf %36, %35 : vector<2x48xf32>
    %cst_17 = arith.constant 0.000000e+00 : f32
    %38 = vector.broadcast %cst_17 : f32 to vector<2x48xf32>
    %39 = arith.cmpf olt, %9, %38 : vector<2x48xf32>
    %cst_18 = arith.constant 0.000000e+00 : f32
    %40 = vector.broadcast %cst_18 : f32 to vector<2x48xf32>
    %41 = arith.subf %40, %37 : vector<2x48xf32>
    %42 = arith.select %39, %41, %37 : vector<2x48xi1>, vector<2x48xf32>
    %cst_19 = arith.constant 1.000000e+00 : f32
    %43 = vector.broadcast %cst_19 : f32 to vector<2x48xf32>
    %44 = arith.addf %43, %42 : vector<2x48xf32>
    %45 = arith.mulf %7, %44 : vector<2x48xf32>
    %c0_20 = arith.constant 0 : index
    %c0_21 = arith.constant 0 : index
    %46 = vector.load %arg4[%c0_20, %c0_21] : memref<48x256xf32, #tpu.memory_space<vmem>>, vector<48x256xf32>
    %cst_22 = arith.constant dense<0.000000e+00> : vector<2x256xf32>
    %47 = tpu.matmul %45, %46, %cst_22 {dimension_numbers = #tpu.dot_dimension_numbers<[1], [0], [0], [1], [0, 0, 1, 1], [], []>} : vector<2x48xf32>, vector<48x256xf32>, vector<2x256xf32> -> vector<2x256xf32>
    %c0_23 = arith.constant 0 : index
    %c0_24 = arith.constant 0 : index
    %48 = vector.load %arg5[%c0_23, %c0_24] : memref<1x256xf32, #tpu.memory_space<vmem>>, vector<1x256xf32>
    %49 = vector.broadcast %48 : vector<1x256xf32> to vector<2x256xf32>
    %50 = arith.addf %47, %49 : vector<2x256xf32>
    %c0_25 = arith.constant 0 : index
    %c0_26 = arith.constant 0 : index
    %51 = vector.load %arg6[%c0_25, %c0_26] : memref<2x256xf32, #tpu.memory_space<vmem>>, vector<2x256xf32>
    tpu.vector_store %arg6[%c0_25, %c0_26], %50 {strides = array<i32>} : memref<2x256xf32, #tpu.memory_space<vmem>>, vector<2x256xf32>,
    return
  }
  func.func @transform_0(%arg0: i32) -> (i32, i32) {
    %c0_i32 = arith.constant 0 : i32
    %c0_i32_0 = arith.constant 0 : i32
    return %arg0, %c0_i32 : i32, i32
  }
  func.func @transform_1(%arg0: i32) -> (i32, i32) {
    %c0_i32 = arith.constant 0 : i32
    %c0_i32_0 = arith.constant 0 : i32
    %c0_i32_1 = arith.constant 0 : i32
    return %c0_i32, %c0_i32_0 : i32, i32
  }
  func.func @transform_2(%arg0: i32) -> (i32, i32) {
    %c0_i32 = arith.constant 0 : i32
    %c0_i32_0 = arith.constant 0 : i32
    %c0_i32_1 = arith.constant 0 : i32
    return %c0_i32, %c0_i32_0 : i32, i32
  }
  func.func @transform_3(%arg0: i32) -> (i32, i32) {
    %c0_i32 = arith.constant 0 : i32
    %c0_i32_0 = arith.constant 0 : i32
    %c0_i32_1 = arith.constant 0 : i32
    return %c0_i32, %c0_i32_0 : i32, i32
  }
  func.func @transform_4(%arg0: i32) -> (i32, i32) {
    %c0_i32 = arith.constant 0 : i32
    %c0_i32_0 = arith.constant 0 : i32
    %c0_i32_1 = arith.constant 0 : i32
    return %c0_i32, %c0_i32_0 : i32, i32
  }
  func.func @transform_5(%arg0: i32) -> (i32, i32) {
    %c0_i32 = arith.constant 0 : i32
    %c0_i32_0 = arith.constant 0 : i32
    return %arg0, %c0_i32 : i32, i32
  }
}

</mosaic_0001>

<bundles_post_ra>
// kernel: tpu_custom_call.1
= control target key start
LH: loop header
LB: loop body
LE: loop exit
PB: predicated region body
PF: predicated region fallthrough
CT: control target
= control target key end

     0   :  { %v351_v3 = vmov 0.0|0.0   ;;  %vm352_vm0 = vmmov 0   ;;  %v353_v6 = vmov 0.0   ;;  %s466_s0 = inlined_call_operand.vmem [shape: f32[2,64], index: 0, kind: input, shape index: {}]   ;;  %s467_s1 = inlined_call_operand.vmem [shape: f32[64,48], index: 1, kind: input, shape index: {}]   ;;  %s468_s2 = inlined_call_operand.vmem [shape: f32[1,48], index: 2, kind: input, shape index: {}]   ;;  %s469_s3 = inlined_call_operand.vmem [shape: f32[48,256], index: 3, kind: input, shape index: {}]   ;;  %s470_s4 = inlined_call_operand.vmem [shape: f32[1,256], index: 4, kind: input, shape index: {}]   ;;  %s471_s5 = inlined_call_operand.hbm [shape: f32[2,256], index: 5, kind: output, shape index: {}]  }
   0x1   :  { %v22_v0 = vld [vmem:[%s467_s1] sm:$0xff]  ;;  %v23_v1 = vld [vmem:[%s467_s1 + $0x8] sm:$0xff]  ;;  %v24_v2 = vld [vmem:[%s467_s1 + $0x10] sm:$0xff]  ;;  %295 = vmatprep.subr.bf16.mxu0 %v351_v3  ;;  %292 = vmatprep.mubr.msk.f32.mxu0 %vm352_vm0, %v353_v6 }
   0x2   :  { %v296_v4 = vpack.c.bf16 %v23_v1, %v22_v0  ;;  %v25_v5 = vld [vmem:[%s467_s1 + $0x18] sm:$0xff]  ;;  %230 = vmatprep.mubr.f32.mxu1 %v353_v6 }
   0x3   :  { %v299_v7 = vpack.c.bf16 %v25_v5, %v24_v2 }
   0x4   :  { %297 = vmatpush3.bf16.msra.mxu0 %v296_v4 }
   0x5   :  { %10 = vsyncpa [#allocation3], 0  ;;  %298 = vmatprep.subr.bf16.mxu0 %v351_v3  ;;  %v26_v8 = vld [vmem:[%s467_s1 + $0x20] sm:$0xff]  ;;  %v27_v9 = vld [vmem:[%s467_s1 + $0x28] sm:$0xff]  ;;  %vm37_vm1 = vcmask 523264   ;;  %vm162_vm3 = vcmask 392192   ;;  %v152_v62 = vlaneseq }
   0x6   :  { %v302_v10 = vpack.c.bf16 %v27_v9, %v26_v8  ;;  %v28_v11 = vld [vmem:[%s467_s1 + $0x30] sm:$0xff]  ;;  %v29_v12 = vld [vmem:[%s467_s1 + $0x38] sm:$0xff]  ;;  %v21_v14 = vld [vmem:[%s466_s0] sm:$0x3]  ;;  %s354_s10 = smov [#allocation2]  }
   0x7   :  { %v305_v13 = vpack.c.bf16 %v29_v12, %v28_v11  ;;  %v139_v15 = vld [vmem:[%s469_s3 + $0x8] sm:$0xff]  ;;  %v141_v16 = vld [vmem:[%s469_s3 + $0x18] sm:$0xff]  ;;  %v138_v18 = vld [vmem:[%s469_s3] sm:$0xff]  ;;  %v153_v63 = vshrl.u32 %v152_v62, 7  ;;  %s255_s11 = sshll.u32 %s354_s10, 4  ;;  %s256_s11 = int_to_ptr.vmem [resolvable:$true] %s255_s11 }
   0x8   :  { %300 = vmatpush3.bf16.msra.mxu0 %v299_v7  ;;  %v307_v17 = vpack.c.bf16 %v141_v16, %v139_v15  ;;  %v140_v19 = vld [vmem:[%s469_s3 + $0x10] sm:$0xff]  ;;  %v143_v21 = vld [vmem:[%s469_s3 + $0x28] sm:$0xff]  ;;  %v145_v22 = vld [vmem:[%s469_s3 + $0x38] sm:$0xff]  ;;  %s327_s12 = scalar_lea.vmem %s256_s11, 64  ;;  %p332_p1 = scmp.lt.s32.totalorder %s256_s11, %s256_s11 }
   0x9   :  { %301 = vmatprep.subr.bf16.mxu0 %v351_v3  ;;  %v309_v20 = vpack.c.bf16 %v140_v19, %v138_v18  ;;  %v311_v23 = vpack.c.bf16 %v145_v22, %v143_v21  ;;  %v142_v24 = vld [vmem:[%s469_s3 + $0x20] sm:$0xff]  ;;  %v144_v25 = vld [vmem:[%s469_s3 + $0x30] sm:$0xff]  ;;  %v147_v27 = vld [vmem:[%s469_s3 + $0x48] sm:$0xff]  ;;  %v154_v0 = vsub.s32 0, %v153_v63  ;;  %v158_v2 = vsub.s32 1, %v153_v63  ;;  %p328_p0 = scmp.ne.s32.totalorder %s256_s11, %s327_s12  ;;  %p333_p2 = scmp.lt.s32.totalorder %s327_s12, %s327_s12 }
   0xa   :  { %308 = vmatprep.subr.bf16.mxu1 %v307_v17  ;;  %v313_v26 = vpack.c.bf16 %v144_v25, %v142_v24  ;;  %v149_v28 = vld [vmem:[%s469_s3 + $0x58] sm:$0xff]  ;;  %v146_v30 = vld [vmem:[%s469_s3 + $0x40] sm:$0xff]  ;;  %v148_v31 = vld [vmem:[%s469_s3 + $0x50] sm:$0xff] }
   0xb   :  { %310 = vmatpush1.bf16.msra.mxu1 %v309_v20  ;;  %v315_v29 = vpack.c.bf16 %v149_v28, %v147_v27  ;;  %v317_v32 = vpack.c.bf16 %v148_v31, %v146_v30  ;;  %v263_v33 = vld [vmem:[%s468_s2] ss:$0 sm:$0xff]  ;;  %p334_p3 = por %p333_p2, %p332_p1 }
   0xc   :  { %303 = vmatpush3.bf16.msra.mxu0 %v302_v10  ;;  %312 = vmatprep.subr.bf16.mxu1 %v311_v23  ;;  %v150_v1 = vld [vmem:[%s470_s4] sm:$0x3] }
   0xd   :  { %304 = vmatprep.subr.bf16.mxu0 %v351_v3  ;;  %v155_v3 = vrot.slane %v150_v1, %v154_v0  ;;  %v159_v4 = vrot.slane %v150_v1, %v158_v2  ;;  %p335_p4 = pnand %p334_p3, %p328_p0 }
   0xf   :  { %314 = vmatpush1.bf16.msra.mxu1 %v313_v26 }
  0x10   :  { %306 = vmatpush3.bf16.msra.mxu0 %v305_v13  ;;  %316 = vmatprep.subr.bf16.mxu1 %v315_v29 }
  0x13   :  { %293 = vmatmul.mubr.msk.f32.vlgmr.msra.gmra.mrb[0].mxu0 %vm37_vm1, %v21_v14  ;;  %318 = vmatpush1.bf16.msra.mxu1 %v317_v32 }
  0xe6   :  { %v107_v34 = vpop.f32.mrb[0].mxu0 }
  0xe7   :  { %v108_v35 = vadd.f32 %v263_v33, %v107_v34  ;;  %v294_v36 = vpop.f32.mrb[1].mxu0 }
  0xe9   :  { %v112_v37 = vmul.f32 0.70710677, %v108_v35  ;;  %v111_v59 = vmul.f32 0.5, %v108_v35 }
  0xeb   :  { %v113_v38 = vand.u32 2147483647, %v112_v37  ;;  %vm133_vm2 = vcmp.lt.f32.partialorder %v112_v37, 0.0 }
  0xed   :  { %v114_v39 = vmul.f32 0.3275911, %v113_v38  ;;  %v127_v41 = vsub.f32 0.0, %v113_v38 }
  0xef   :  { %v115_v40 = vadd.f32 1.0, %v114_v39  ;;  %v128_v43 = vmul.f32 %v127_v41, %v113_v38 }
  0xf1   :  { %323 = vrcp.f32 %v115_v40  ;;  %v129_v46 = vmul.f32 1.442695, %v128_v43 }
  0xf3   :  { %325 = vpow2.f32 %v129_v46 }
  0xfb   :  { %v324_v42 = vpop.eup %323 }
  0xfc   :  { %v118_v44 = vmul.f32 1.0614054, %v324_v42 }
  0xfd   :  { %v326_v54 = vpop.eup %325 }
  0xfe   :  { %v119_v45 = vadd.f32 -1.4531521, %v118_v44 }
 0x100   :  { %v120_v47 = vmul.f32 %v324_v42, %v119_v45 }
 0x102   :  { %v121_v48 = vadd.f32 1.4214138, %v120_v47 }
 0x104   :  { %v122_v49 = vmul.f32 %v324_v42, %v121_v48 }
 0x106   :  { %v123_v50 = vadd.f32 -0.28449672, %v122_v49 }
 0x108   :  { %v124_v51 = vmul.f32 %v324_v42, %v123_v50 }
 0x10a   :  { %v125_v52 = vadd.f32 0.2548296, %v124_v51 }
 0x10c   :  { %v126_v53 = vmul.f32 %v324_v42, %v125_v52 }
 0x10e   :  { %v131_v55 = vmul.f32 %v326_v54, %v126_v53 }
 0x110   :  { %v132_v56 = vsub.f32 1.0, %v131_v55 }
 0x112   :  { %v134_v57 = vsub.f32 0.0, %v132_v56 }
 0x114   :  { %v135_v58 = vsel %vm133_vm2, %v134_v57, %v132_v56 }
 0x115   :  { %v136_v60 = vadd.f32 1.0, %v135_v58 }
 0x117   :  { %v137_v61 = vmul.f32 %v136_v60, %v111_v59 }
 0x119   :  { %265 = vmatmul.mubr.msk.f32.vlgmr.msra.gmra.mrb[0].mxu1 %vm162_vm3, %v137_v61 }
 0x1ec   :  { %v232_v5 = vpop.f32.mrb[0].mxu1 }
 0x1ed   :  { %v233_v6 = vadd.f32 %v232_v5, %v155_v3  ;;  %v234_v7 = vpop.f32.mrb[1].mxu1 }
 0x1ee   :  { %v235_v8 = vadd.f32 %v234_v7, %v159_v4 }
 0x1f0   :  { %v239_v9 = vcombine.low %v233_v6, %v235_v8 }
 0x1f2   :  { %266 = vst.sshfl [vmem:[#allocation2] sm:$0x33 pattern:$0x76325410] %v239_v9 }
 0x1f3   :  { %338 = shalt.err (!%p335_p4)
}
 0x1f4   :  { %s339_s14 = scalar_lea.hbm %s471_s5, 64 }
 0x1f5   :  { %p340_p5 = scmp.ne.s32.totalorder %s471_s5, %s339_s14  ;;  %p343_p6 = scmp.lt.u32.totalorder %s339_s14, %s471_s5 }
 0x1f7   :  { %p345_p7 = pnand %p343_p6, %p340_p5 }
 0x1f9   :  { %348 = shalt.err (!%p345_p7)
}
 0x1fa   :  { %258 = dma.vmem_to_hbm [thread:$0]  %s256_s11, 64, %s471_s5, [#allocation3]  }
 0x1fb   :  { %349 = dma.done.wait [#allocation3], 64  }
 0x1fc   :  { %350 = vsyncadd [#allocation3], 4294967232 }
 0x1fd   :  { %262 = vsyncpa [#allocation3], 1 }

</bundles_post_ra>
